<compile_context>
chip_gen: v7x
topology: tpu7x:2x2x1
jax: 0.10.0
libtpu: 0.0.40
codegen_flags: <defaults>
</compile_context>

<pallas_src>
import functools
import math

import jax
import jax.numpy as jnp
from jax.experimental import pallas as pl
from jax.experimental.pallas import tpu as pltpu


def _ohem_dice_tile_kernel(x_ref, y_ref, loss_ref, part_ref, *,
                           thresh_val, smooth):
    x = x_ref[...]                               # (tile_rows, HW) float32
    y = y_ref[...].astype(jnp.float32)           # bf16 -> f32 (exact for 0/1)

    # One shared EUP exp feeds both BCE and sigmoid.
    e = jnp.exp(-jnp.abs(x))

    # Numerically stable BCE-with-logits: max(x,0) - x*y + log1p(exp(-|x|)).
    bce = jnp.maximum(x, 0.0) - x * y + jnp.log1p(e)
    loss_ref[...] = bce.astype(loss_ref.dtype)   # bf16 store (top-k fallback only)

    # OHEM per-tile partial reductions (exact integers in f32 for tile < 2^24 elems).
    hard = bce > thresh_val
    sum_hard = jnp.sum(jnp.where(hard, bce, 0.0))
    cnt_hard = jnp.sum(hard.astype(jnp.float32))

    # Sigmoid from the shared exp: p = [x >= 0 ? 1 : e] / (1 + e).
    p = jnp.where(x >= 0.0, 1.0, e) * pl.reciprocal(1.0 + e, approx=True)

    # Dice: one row == one (b, c) channel; exact divide (tile_rows values only).
    inter = jnp.sum(p * y, axis=1, keepdims=True)
    psum = jnp.sum(p, axis=1, keepdims=True)
    ysum = jnp.sum(y, axis=1, keepdims=True)
    dice_per = 1.0 - (2.0 * inter + smooth) / (psum + ysum + smooth)
    dice_sum = jnp.sum(dice_per)

    # Pack the three scalars into one lane-dense (8, 128) output tile.
    sub = jax.lax.broadcasted_iota(jnp.int32, (8, 128), 0)
    lane = jax.lax.broadcasted_iota(jnp.int32, (8, 128), 1)
    vals = jnp.where(lane == 0, sum_hard,
                     jnp.where(lane == 1, cnt_hard,
                               jnp.where(lane == 2, dice_sum, 0.0)))
    part_ref[...] = jnp.where(sub == 0, vals, 0.0)


def ohem_bce_dice(logits, labels, *, thresh=0.6, alpha=0.9, smooth=1.0):
    B, C, H, W = logits.shape
    BC, HW = B * C, H * W
    numel = BC * HW
    thresh_val = float(-math.log(thresh))
    n_min = int(numel * 0.15)

    # ---- lane-dense 2D layout: one row per (b, c) channel ------------------
    x2d = logits.reshape(BC, HW).astype(jnp.float32)
    # labels as bf16 (exact for binary 0/1 masks) halves that HBM stream.
    y2d = labels.reshape(BC, HW).astype(jnp.bfloat16)

    # ---- row-tile size: ~2 MiB of f32 logits per tile, multiple of 16 ------
    # (2 inputs + 1 output tile, double-buffered, stays well under the 32 MiB
    #  scoped VMEM / 64 MiB physical budget of v7x)
    rows_fit = max(1, (2 * 1024 * 1024) // (HW * 4))
    tile_rows = min(BC, rows_fit)
    tile_rows = max(16, (tile_rows // 16) * 16)
    num_tiles = pl.cdiv(BC, tile_rows)
    bc_pad = num_tiles * tile_rows

    if bc_pad != BC:
        # Padded rows contribute ~0: bce(x=-30, y=0) ~ 1e-13 (< thresh, never
        # counted as hard) and sigmoid(-30) ~ 1e-13 (dice_per ~ 1e-11).
        x2d = jnp.pad(x2d, ((0, bc_pad - BC), (0, 0)), constant_values=-30.0)
        y2d = jnp.pad(y2d, ((0, bc_pad - BC), (0, 0)), constant_values=0.0)

    kernel = functools.partial(_ohem_dice_tile_kernel,
                               thresh_val=thresh_val, smooth=float(smooth))

    loss_map, partials = pl.pallas_call(
        kernel,
        grid=(num_tiles,),
        in_specs=[
            pl.BlockSpec((tile_rows, HW), lambda i: (i, 0)),
            pl.BlockSpec((tile_rows, HW), lambda i: (i, 0)),
        ],
        out_specs=[
            pl.BlockSpec((tile_rows, HW), lambda i: (i, 0)),
            pl.BlockSpec((8, 128), lambda i: (i, 0)),
        ],
        out_shape=(
            jax.ShapeDtypeStruct((bc_pad, HW), jnp.bfloat16),
            jax.ShapeDtypeStruct((num_tiles * 8, 128), jnp.float32),
        ),
        compiler_params=pltpu.CompilerParams(
            dimension_semantics=("parallel",),
            vmem_limit_bytes=32 * 1024 * 1024),
    )(x2d, y2d)

    # ---- combine per-tile partials in JAX ----------------------------------
    parts = partials.reshape(num_tiles, 8, 128)
    sum_hard = jnp.sum(parts[:, 0, 0])
    cnt_hard = jnp.sum(parts[:, 0, 1].astype(jnp.int32))   # exact integer count
    dice_loss = jnp.sum(parts[:, 0, 2]) / float(BC)

    # ---- OHEM branch selection (data-dependent glue) ------------------------
    loss_flat = loss_map[:BC].reshape(-1).astype(jnp.float32)

    def _mean_topk(op):
        lf, _, _ = op
        return jnp.mean(jax.lax.top_k(lf, n_min)[0])

    def _mean_hard(op):
        _, s, c = op
        return s / jnp.maximum(c, 1.0)

    bce_loss = jax.lax.cond(
        cnt_hard < n_min, _mean_topk, _mean_hard,
        (loss_flat, sum_hard, cnt_hard.astype(jnp.float32)))

    return alpha * bce_loss + (1.0 - alpha) * dice_loss


def _reference(logits, labels, *, thresh=0.6, alpha=0.9, smooth=1.0):
    # Pure-JAX reference mirroring the PyTorch module, for a sanity check.
    x = logits.astype(jnp.float32)
    y = labels.astype(jnp.float32)
    bce = jnp.maximum(x, 0.0) - x * y + jnp.log1p(jnp.exp(-jnp.abs(x)))
    thresh_val = -math.log(thresh)
    n_min = int(x.size * 0.15)
    flat = bce.reshape(-1)
    mask = flat > thresh_val
    cnt = jnp.sum(mask)
    mean_hard = jnp.sum(jnp.where(mask, flat, 0.0)) / jnp.maximum(cnt, 1)
    mean_topk = jnp.mean(jax.lax.top_k(flat, n_min)[0])
    bce_loss = jnp.where(cnt < n_min, mean_topk, mean_hard)

    p = jax.nn.sigmoid(x)
    inter = jnp.sum(p * y, axis=(2, 3))
    denom = jnp.sum(p, axis=(2, 3)) + jnp.sum(y, axis=(2, 3)) + smooth
    dice = jnp.sum(1.0 - (2.0 * inter + smooth) / denom) / (x.shape[0] * x.shape[1])
    return alpha * bce_loss + (1.0 - alpha) * dice


if __name__ == "__main__":
    key = jax.random.PRNGKey(0)
    k1, k2 = jax.random.split(key)
    B, C, H, W = 2, 4, 16, 16
    logits = jax.random.normal(k1, (B, C, H, W), dtype=jnp.float32)
    labels = (jax.random.uniform(k2, (B, C, H, W)) > 0.5).astype(jnp.float32)

    out = ohem_bce_dice(logits, labels)
    out = jax.block_until_ready(out)

    ref = _reference(logits, labels)
    # approx-reciprocal sigmoid in the dice path (0.1 weight) => ~1e-4-level
    # deviation; BCE path stays exact f32.
    assert jnp.allclose(out, ref, rtol=1e-3, atol=1e-3), (out, ref)
    print("KERNEL_OK")
</pallas_src>

<mosaic_0001>
module attributes {stable_mosaic.version = 11 : i64} {
  func.func @_ohem_dice_tile_kernel(%arg0: i32, %arg1: memref<16x256xf32, #tpu.memory_space<vmem>>, %arg2: memref<16x256xbf16, #tpu.memory_space<vmem>>, %arg3: memref<16x256xbf16, #tpu.memory_space<vmem>>, %arg4: memref<8x128xf32, #tpu.memory_space<vmem>>) attributes {dimension_semantics = [#tpu.dimension_semantics<parallel>], iteration_bounds = array<i64: 1>, scalar_prefetch = 0 : i64, scratch_operands = 0 : i64, tpu.core_type = #tpu.core_type<tc>, window_params = [{transform_indices = @transform_0, window_bounds = array<i64: 16, 256>}, {transform_indices = @transform_1, window_bounds = array<i64: 16, 256>}, {transform_indices = @transform_2, window_bounds = array<i64: 16, 256>}, {transform_indices = @transform_3, window_bounds = array<i64: 8, 128>}]} {
    %c0 = arith.constant 0 : index
    %c0_0 = arith.constant 0 : index
    %0 = vector.load %arg1[%c0, %c0_0] : memref<16x256xf32, #tpu.memory_space<vmem>>, vector<16x256xf32>
    %c0_1 = arith.constant 0 : index
    %c0_2 = arith.constant 0 : index
    %1 = vector.load %arg2[%c0_1, %c0_2] : memref<16x256xbf16, #tpu.memory_space<vmem>>, vector<16x256xbf16>
    %2 = arith.extf %1 : vector<16x256xbf16> to vector<16x256xf32>
    %3 = math.absf %0 : vector<16x256xf32>
    %cst = arith.constant 0.000000e+00 : f32
    %4 = vector.broadcast %cst : f32 to vector<16x256xf32>
    %5 = arith.subf %4, %3 : vector<16x256xf32>
    %6 = math.exp %5 : vector<16x256xf32>
    %cst_3 = arith.constant 0.000000e+00 : f32
    %7 = vector.broadcast %cst_3 : f32 to vector<16x256xf32>
    %8 = arith.maximumf %0, %7 : vector<16x256xf32>
    %9 = arith.mulf %0, %2 : vector<16x256xf32>
    %10 = arith.subf %8, %9 : vector<16x256xf32>
    %11 = math.log1p %6 : vector<16x256xf32>
    %12 = arith.addf %10, %11 : vector<16x256xf32>
    %13 = arith.truncf %12 : vector<16x256xf32> to vector<16x256xbf16>
    %c0_4 = arith.constant 0 : index
    %c0_5 = arith.constant 0 : index
    %14 = vector.load %arg3[%c0_4, %c0_5] : memref<16x256xbf16, #tpu.memory_space<vmem>>, vector<16x256xbf16>
    tpu.vector_store %arg3[%c0_4, %c0_5], %13 {strides = array<i32>} : memref<16x256xbf16, #tpu.memory_space<vmem>>, vector<16x256xbf16>,
    %cst_6 = arith.constant 0.510825634 : f32
    %15 = vector.broadcast %cst_6 : f32 to vector<16x256xf32>
    %16 = arith.cmpf ogt, %12, %15 : vector<16x256xf32>
    %cst_7 = arith.constant 0.000000e+00 : f32
    %17 = vector.broadcast %cst_7 : f32 to vector<16x256xf32>
    %18 = arith.select %16, %12, %17 : vector<16x256xi1>, vector<16x256xf32>
    %19 = vector.shape_cast %18 : vector<16x256xf32> to vector<1x16x256xf32>
    %cst_8 = arith.constant dense<0.000000e+00> : vector<1xf32>
    %20 = vector.multi_reduction <add>, %19, %cst_8 [1, 2] : vector<1x16x256xf32> to vector<1xf32>
    %21 = vector.shape_cast %20 : vector<1xf32> to vector<1x1x1xf32>
    %22 = vector.extract %21[0, 0, 0] : f32 from vector<1x1x1xf32>
    %23 = arith.extui %16 : vector<16x256xi1> to vector<16x256xi32>
    %24 = arith.sitofp %23 : vector<16x256xi32> to vector<16x256xf32>
    %25 = vector.shape_cast %24 : vector<16x256xf32> to vector<1x16x256xf32>
    %cst_9 = arith.constant dense<0.000000e+00> : vector<1xf32>
    %26 = vector.multi_reduction <add>, %25, %cst_9 [1, 2] : vector<1x16x256xf32> to vector<1xf32>
    %27 = vector.shape_cast %26 : vector<1xf32> to vector<1x1x1xf32>
    %28 = vector.extract %27[0, 0, 0] : f32 from vector<1x1x1xf32>
    %cst_10 = arith.constant 0.000000e+00 : f32
    %29 = vector.broadcast %cst_10 : f32 to vector<16x256xf32>
    %30 = arith.cmpf oge, %0, %29 : vector<16x256xf32>
    %cst_11 = arith.constant 1.000000e+00 : f32
    %31 = vector.broadcast %cst_11 : f32 to vector<16x256xf32>
    %32 = arith.select %30, %31, %6 : vector<16x256xi1>, vector<16x256xf32>
    %cst_12 = arith.constant 1.000000e+00 : f32
    %33 = vector.broadcast %cst_12 : f32 to vector<16x256xf32>
    %34 = arith.addf %33, %6 : vector<16x256xf32>
    %35 = tpu.reciprocal %34 {approx = true} : vector<16x256xf32> -> vector<16x256xf32>
    %36 = arith.mulf %32, %35 : vector<16x256xf32>
    %37 = arith.mulf %36, %2 : vector<16x256xf32>
    %cst_13 = arith.constant dense<0.000000e+00> : vector<16xf32>
    %38 = vector.multi_reduction <add>, %37, %cst_13 [1] : vector<16x256xf32> to vector<16xf32>
    %39 = vector.shape_cast %38 : vector<16xf32> to vector<16x1xf32>
    %cst_14 = arith.constant dense<0.000000e+00> : vector<16xf32>
    %40 = vector.multi_reduction <add>, %36, %cst_14 [1] : vector<16x256xf32> to vector<16xf32>
    %41 = vector.shape_cast %40 : vector<16xf32> to vector<16x1xf32>
    %cst_15 = arith.constant dense<0.000000e+00> : vector<16xf32>
    %42 = vector.multi_reduction <add>, %2, %cst_15 [1] : vector<16x256xf32> to vector<16xf32>
    %43 = vector.shape_cast %42 : vector<16xf32> to vector<16x1xf32>
    %cst_16 = arith.constant 2.000000e+00 : f32
    %44 = vector.broadcast %cst_16 : f32 to vector<16x1xf32>
    %45 = arith.mulf %44, %39 : vector<16x1xf32>
    %cst_17 = arith.constant 1.000000e+00 : f32
    %46 = vector.broadcast %cst_17 : f32 to vector<16x1xf32>
    %47 = arith.addf %45, %46 : vector<16x1xf32>
    %48 = arith.addf %41, %43 : vector<16x1xf32>
    %cst_18 = arith.constant 1.000000e+00 : f32
    %49 = vector.broadcast %cst_18 : f32 to vector<16x1xf32>
    %50 = arith.addf %48, %49 : vector<16x1xf32>
    %51 = arith.divf %47, %50 : vector<16x1xf32>
    %cst_19 = arith.constant 1.000000e+00 : f32
    %52 = vector.broadcast %cst_19 : f32 to vector<16x1xf32>
    %53 = arith.subf %52, %51 : vector<16x1xf32>
    %54 = vector.shape_cast %53 : vector<16x1xf32> to vector<1x16x1xf32>
    %cst_20 = arith.constant dense<0.000000e+00> : vector<1xf32>
    %55 = vector.multi_reduction <add>, %54, %cst_20 [1, 2] : vector<1x16x1xf32> to vector<1xf32>
    %56 = vector.shape_cast %55 : vector<1xf32> to vector<1x1x1xf32>
    %57 = vector.extract %56[0, 0, 0] : f32 from vector<1x1x1xf32>
    %58 = tpu.iota {dimensions = array<i32: 0>} : vector<8x128xi32>
    %59 = tpu.iota {dimensions = array<i32: 1>} : vector<8x128xi32>
    %c0_i32 = arith.constant 0 : i32
    %60 = vector.broadcast %c0_i32 : i32 to vector<8x128xi32>
    %61 = arith.cmpi eq, %59, %60 : vector<8x128xi32>
    %c1_i32 = arith.constant 1 : i32
    %62 = vector.broadcast %c1_i32 : i32 to vector<8x128xi32>
    %63 = arith.cmpi eq, %59, %62 : vector<8x128xi32>
    %c2_i32 = arith.constant 2 : i32
    %64 = vector.broadcast %c2_i32 : i32 to vector<8x128xi32>
    %65 = arith.cmpi eq, %59, %64 : vector<8x128xi32>
    %cst_21 = arith.constant 0.000000e+00 : f32
    %66 = vector.broadcast %57 : f32 to vector<8x128xf32>
    %67 = vector.broadcast %cst_21 : f32 to vector<8x128xf32>
    %68 = arith.select %65, %66, %67 : vector<8x128xi1>, vector<8x128xf32>
    %69 = vector.broadcast %28 : f32 to vector<8x128xf32>
    %70 = arith.select %63, %69, %68 : vector<8x128xi1>, vector<8x128xf32>
    %71 = vector.broadcast %22 : f32 to vector<8x128xf32>
    %72 = arith.select %61, %71, %70 : vector<8x128xi1>, vector<8x128xf32>
    %c0_i32_22 = arith.constant 0 : i32
    %73 = vector.broadcast %c0_i32_22 : i32 to vector<8x128xi32>
    %74 = arith.cmpi eq, %58, %73 : vector<8x128xi32>
    %cst_23 = arith.constant 0.000000e+00 : f32
    %75 = vector.broadcast %cst_23 : f32 to vector<8x128xf32>
    %76 = arith.select %74, %72, %75 : vector<8x128xi1>, vector<8x128xf32>
    %c0_24 = arith.constant 0 : index
    %c0_25 = arith.constant 0 : index
    %77 = vector.load %arg4[%c0_24, %c0_25] : memref<8x128xf32, #tpu.memory_space<vmem>>, vector<8x128xf32>
    tpu.vector_store %arg4[%c0_24, %c0_25], %76 {strides = array<i32>} : memref<8x128xf32, #tpu.memory_space<vmem>>, vector<8x128xf32>,
    return
  }
  func.func @transform_0(%arg0: i32) -> (i32, i32) {
    %c0_i32 = arith.constant 0 : i32
    %c0_i32_0 = arith.constant 0 : i32
    return %arg0, %c0_i32 : i32, i32
  }
  func.func @transform_1(%arg0: i32) -> (i32, i32) {
    %c0_i32 = arith.constant 0 : i32
    %c0_i32_0 = arith.constant 0 : i32
    return %arg0, %c0_i32 : i32, i32
  }
  func.func @transform_2(%arg0: i32) -> (i32, i32) {
    %c0_i32 = arith.constant 0 : i32
    %c0_i32_0 = arith.constant 0 : i32
    return %arg0, %c0_i32 : i32, i32
  }
  func.func @transform_3(%arg0: i32) -> (i32, i32) {
    %c0_i32 = arith.constant 0 : i32
    %c0_i32_0 = arith.constant 0 : i32
    return %arg0, %c0_i32 : i32, i32
  }
}

</mosaic_0001>

<bundles_post_ra>
// kernel: tpu_custom_call.1
= control target key start
LH: loop header
LB: loop body
LE: loop exit
PB: predicated region body
PF: predicated region fallthrough
CT: control target
= control target key end

     0   :  { %9 = vsyncpa [#allocation3], 0  ;;  %s609_s0 = inlined_call_operand.hbm [shape: f32[16,256], index: 0, kind: input, shape index: {}]   ;;  %s610_s1 = inlined_call_operand.hbm [shape: bf16[16,256], index: 1, kind: input, shape index: {}]   ;;  %s611_s2 = inlined_call_operand.hbm [shape: bf16[16,256], index: 2, kind: output, shape index: {0}]   ;;  %s612_s3 = inlined_call_operand.hbm [shape: f32[8,128], index: 3, kind: output, shape index: {1}]  }
   0x1   :  { %10 = vsyncpa [#allocation6], 0 }
   0x2   :  { %11 = vsyncpa [#allocation4], 0 }
   0x3   :  { %12 = vsyncpa [#allocation9], 0  ;;  %s439_s12 = smov [#allocation2]   ;;  %s343_s16 = scalar_lea.hbm %s609_s0, 512 }
   0x4   :  { %s18_s13 = sshll.u32 %s439_s12, 4  ;;  %p344_p0 = scmp.ne.s32.totalorder %s609_s0, %s343_s16  ;;  %s19_s13 = int_to_ptr.vmem [resolvable:$true] %s18_s13 }
   0x5   :  { %p347_p1 = scmp.lt.u32.totalorder %s343_s16, %s609_s0 }
   0x7   :  { %p349_p2 = pnand %p347_p1, %p344_p0 }
   0x9   :  { %352 = shalt.err (!%p349_p2)
}
   0xa   :  { %s353_s21 = scalar_lea.vmem %s19_s13, 512  ;;  %p358_p4 = scmp.lt.s32.totalorder %s19_s13, %s19_s13 }
   0xb   :  { %p354_p3 = scmp.ne.s32.totalorder %s19_s13, %s353_s21  ;;  %p359_p5 = scmp.lt.s32.totalorder %s353_s21, %s353_s21 }
   0xd   :  { %p360_p6 = por %p359_p5, %p358_p4 }
   0xf   :  { %p361_p7 = pnand %p360_p6, %p354_p3 }
  0x11   :  { %364 = shalt.err (!%p361_p7)
}
  0x12   :  { %s440_s22 = smov 256   ;;  %s441_s23 = smov 16  }
  0x13   :  { %24 = dma.hbm_to_vmem [thread:$0]  %s609_s0, 512, %s19_s13, [#allocation3], %s440_s22, %s440_s22, %s441_s23  }
  0x14   :  { %s442_s26 = smov [#allocation5]   ;;  %s365_s30 = scalar_lea.hbm %s610_s1, 256 }
  0x15   :  { %s30_s27 = sshll.u32 %s442_s26, 4  ;;  %p366_p8 = scmp.ne.s32.totalorder %s610_s1, %s365_s30  ;;  %s31_s27 = int_to_ptr.vmem [resolvable:$true] %s30_s27 }
  0x16   :  { %p369_p9 = scmp.lt.u32.totalorder %s365_s30, %s610_s1 }
  0x18   :  { %p371_p10 = pnand %p369_p9, %p366_p8 }
  0x1a   :  { %374 = shalt.err (!%p371_p10)
}
  0x1b   :  { %s375_s8 = scalar_lea.vmem %s31_s27, 256  ;;  %p380_p12 = scmp.lt.s32.totalorder %s31_s27, %s31_s27 }
  0x1c   :  { %p376_p11 = scmp.ne.s32.totalorder %s31_s27, %s375_s8  ;;  %p381_p13 = scmp.lt.s32.totalorder %s375_s8, %s375_s8 }
  0x1e   :  { %p382_p0 = por %p381_p13, %p380_p12 }
  0x20   :  { %p383_p1 = pnand %p382_p0, %p376_p11 }
  0x22   :  { %386 = shalt.err (!%p383_p1)
}
  0x23   :  { %s443_s0 = smov 128   ;;  %s444_s9 = smov 8  }
  0x24   :  { %36 = dma.hbm_to_vmem [thread:$0]  %s610_s1, 256, %s31_s27, [#allocation6], %s443_s0, %s443_s0, %s444_s9  }
  0x25   :  { %431 = dma.done.wait [#allocation3], 512  }
  0x26   :  { %432 = vsyncadd [#allocation3], 4294966784 }
  0x27   :  { %433 = dma.done.wait [#allocation6], 256  }
  0x28   :  { %434 = vsyncadd [#allocation6], 4294967040  ;;  %v47_v0 = vld [vmem:[#allocation5] sm:$0xff]  ;;  %v497_v2 = vld [vmem:[#allocation2 + $0x8] sm:$0xff]  ;;  %vm231_vm12 = vcmask 7168   ;;  %s446_s1 = smov [#allocation7]  }
  0x29   :  { %v495_v1 = vld [vmem:[#allocation2] sm:$0xff]  ;;  %v499_v3 = vunpack.c.l.bf16 %v47_v0  ;;  %v501_v4 = vunpack.c.h.bf16 %v47_v0  ;;  %v54_v6 = vand.u32 2147483647, %v497_v2  ;;  %v48_v7 = vld [vmem:[#allocation5 + $0x8] sm:$0xff]  ;;  %v505_v8 = vld [vmem:[#allocation2 + $0x10] sm:$0xff]  ;;  %vm176_vm1 = vcmp.ge.f32.partialorder %v497_v2, 0.0 }
  0x2a   :  { %v53_v5 = vand.u32 2147483647, %v495_v1  ;;  %v507_v9 = vld [vmem:[#allocation2 + $0x18] sm:$0xff]  ;;  %v511_v13 = vunpack.c.l.bf16 %v48_v7  ;;  %v513_v14 = vunpack.c.h.bf16 %v48_v7  ;;  %v55_v15 = vand.u32 2147483647, %v505_v8  ;;  %s265_s12 = sshll.u32 %s446_s1, 4  ;;  %s266_s12 = int_to_ptr.vmem [resolvable:$true] %s265_s12 }
  0x2b   :  { %v211_v10 = vadd.f32 %v501_v4, %v499_v3  ;;  %v58_v12 = vsub.f32 0.0, %v54_v6  ;;  %v56_v18 = vand.u32 2147483647, %v507_v9  ;;  %vm175_vm0 = vcmp.ge.f32.partialorder %v495_v1, 0.0  ;;  %s387_s13 = scalar_lea.vmem %s266_s12, 256  ;;  %p392_p3 = scmp.lt.s32.totalorder %s266_s12, %s266_s12 }
  0x2c   :  { %v57_v11 = vsub.f32 0.0, %v53_v5  ;;  %v214_v19 = vadd.f32 %v513_v14, %v511_v13  ;;  %v59_v20 = vsub.f32 0.0, %v55_v15  ;;  %vm177_vm2 = vcmp.ge.f32.partialorder %v505_v8, 0.0  ;;  %p388_p2 = scmp.ne.s32.totalorder %s266_s12, %s387_s13  ;;  %p393_p4 = scmp.lt.s32.totalorder %s387_s13, %s387_s13 }
  0x2d   :  { %212 = vadd.xlane.f32.xlu1 %v211_v10  ;;  %v63_v17 = vmul.f32 1.442695, %v58_v12  ;;  %v60_v21 = vsub.f32 0.0, %v56_v18  ;;  %vm178_vm3 = vcmp.ge.f32.partialorder %v507_v9, 0.0  ;;  %v69_v56 = vmax.f32 %v495_v1, 0.0 }
  0x2e   :  { %v61_v16 = vmul.f32 1.442695, %v57_v11  ;;  %v65_v22 = vmul.f32 1.442695, %v59_v20  ;;  %v73_v57 = vmul.f32 %v499_v3, %v495_v1  ;;  %v70_v58 = vmax.f32 %v497_v2, 0.0  ;;  %p394_p5 = por %p393_p4, %p392_p3 }
  0x2f   :  { %v67_v23 = vmul.f32 1.442695, %v60_v21  ;;  %v74_v59 = vmul.f32 %v501_v4, %v497_v2  ;;  %v75_v2 = vmul.f32 %v511_v13, %v505_v8  ;;  %v72_v12 = vmax.f32 %v507_v9, 0.0 }
  0x30   :  { %315 = vpow2.f32 %v61_v16  ;;  %v76_v15 = vmul.f32 %v513_v14, %v507_v9  ;;  %p395_p6 = pnand %p394_p5, %p388_p2 }
  0x31   :  { %317 = vpow2.f32 %v63_v17  ;;  %215 = vadd.xlane.f32.xlu1 %v214_v19  ;;  %v78_v11 = vsub.f32 %v70_v58, %v74_v59 }
  0x32   :  { %319 = vpow2.f32 %v65_v22  ;;  %v80_v9 = vsub.f32 %v72_v12, %v76_v15 }
  0x33   :  { %321 = vpow2.f32 %v67_v23 }
  0x3a   :  { %v519_v24 = vpop.eup %315 }
  0x3b   :  { %v521_v25 = vpop.eup %317  ;;  %v81_v26 = vadd.f32 1.0, %v519_v24  ;;  %v179_v32 = vsel %vm175_vm0, 1.0, %v519_v24  ;;  %v84_v53 = vmul.f32 -0.5, %v519_v24  ;;  %v87_v62 = vand.u32 2147483647, %v519_v24 }
  0x3c   :  { %v90_v27 = vadd.f32 1.0, %v521_v25  ;;  %v525_v28 = vpop.eup %319  ;;  %v180_v34 = vsel %vm176_vm1, 1.0, %v521_v25  ;;  %v93_v54 = vmul.f32 -0.5, %v521_v25  ;;  %v96_v63 = vand.u32 2147483647, %v521_v25 }
  0x3d   :  { %323 = vrcp.f32 %v81_v26  ;;  %v527_v29 = vpop.eup %321  ;;  %v99_v30 = vadd.f32 1.0, %v525_v28  ;;  %v181_v37 = vsel %vm177_vm2, 1.0, %v525_v28  ;;  %v85_v60 = vadd.f32 1.0, %v84_v53 }
  0x3e   :  { %325 = vrcp.f32 %v90_v27  ;;  %v108_v31 = vadd.f32 1.0, %v527_v29  ;;  %v182_v39 = vsel %vm178_vm3, 1.0, %v527_v29  ;;  %v94_v61 = vadd.f32 1.0, %v93_v54 }
  0x3f   :  { %327 = vrcp.f32 %v99_v30  ;;  %v102_v0 = vmul.f32 -0.5, %v525_v28  ;;  %v86_v6 = vmul.f32 %v519_v24, %v85_v60  ;;  %vm88_vm4 = vcmp.lt.f32.partialorder %v87_v62, 0.0004427343 }
  0x40   :  { %329 = vrcp.f32 %v108_v31  ;;  %v95_v10 = vmul.f32 %v521_v25, %v94_v61  ;;  %vm97_vm5 = vcmp.lt.f32.partialorder %v96_v63, 0.0004427343  ;;  %v105_v21 = vand.u32 2147483647, %v525_v28 }
  0x41   :  { %331 = vlog2.f32 %v90_v27  ;;  %v103_v20 = vadd.f32 1.0, %v102_v0  ;;  %v111_v23 = vmul.f32 -0.5, %v527_v29 }
  0x42   :  { %333 = vlog2.f32 %v81_v26  ;;  %vm106_vm6 = vcmp.lt.f32.partialorder %v105_v21, 0.0004427343 }
  0x43   :  { %335 = vlog2.f32 %v99_v30  ;;  %v104_v24 = vmul.f32 %v525_v28, %v103_v20  ;;  %v112_v26 = vadd.f32 1.0, %v111_v23 }
  0x44   :  { %337 = vlog2.f32 %v108_v31 }
  0x45   :  { %v113_v31 = vmul.f32 %v527_v29, %v112_v26 }
  0x47   :  { %v324_v33 = vpop.eup %323 }
  0x48   :  { %v191_v35 = vmul.f32 %v324_v33, %v179_v32  ;;  %v326_v36 = vpop.eup %325 }
  0x49   :  { %v192_v38 = vmul.f32 %v326_v36, %v180_v34  ;;  %v328_v40 = vpop.eup %327  ;;  %v445_v34 = vmov 0.0  }
  0x4a   :  { %v330_v41 = vpop.eup %329  ;;  %v193_v43 = vmul.f32 %v328_v40, %v181_v37  ;;  %v195_v45 = vmul.f32 %v191_v35, %v499_v3  ;;  %v71_v3 = vmax.f32 %v505_v8, 0.0  ;;  %v114_v8 = vand.u32 2147483647, %v527_v29 }
  0x4b   :  { %v205_v42 = vadd.f32 %v192_v38, %v191_v35  ;;  %v194_v44 = vmul.f32 %v330_v41, %v182_v39  ;;  %v196_v46 = vmul.f32 %v192_v38, %v501_v4  ;;  %v332_v52 = vpop.eup %331  ;;  %v77_v4 = vsub.f32 %v69_v56, %v73_v57 }
  0x4c   :  { %v197_v47 = vmul.f32 %v193_v43, %v511_v13  ;;  %v334_v55 = vpop.eup %333  ;;  %v92_v7 = vmul.f32 0.6931472, %v332_v52  ;;  %v79_v22 = vsub.f32 %v71_v3, %v75_v2  ;;  %vm115_vm8 = vcmp.lt.f32.partialorder %v114_v8, 0.0004427343 }
  0x4d   :  { %206 = vadd.xlane.f32.xlu0 %v205_v42  ;;  %v208_v48 = vadd.f32 %v194_v44, %v193_v43  ;;  %v198_v49 = vmul.f32 %v194_v44, %v513_v14  ;;  %v199_v51 = vadd.f32 %v196_v46, %v195_v45  ;;  %v83_v5 = vmul.f32 0.6931472, %v334_v55  ;;  %v336_v1 = vpop.eup %335 }
  0x4e   :  { %v338_v17 = vpop.eup %337  ;;  %v98_v18 = vsel %vm97_vm5, %v95_v10, %v92_v7  ;;  %v101_v19 = vmul.f32 0.6931472, %v336_v1 }
  0x4f   :  { %v202_v50 = vadd.f32 %v198_v49, %v197_v47  ;;  %v89_v16 = vsel %vm88_vm4, %v86_v6, %v83_v5  ;;  %v568_v25 = vadd.f32 %v98_v18, %v78_v11  ;;  %v110_v14 = vmul.f32 0.6931472, %v338_v17 }
  0x50   :  { %v565_v13 = vadd.f32 %v89_v16, %v77_v4  ;;  %v107_v27 = vsel %vm106_vm6, %v104_v24, %v101_v19 }
  0x51   :  { %209 = vadd.xlane.f32.xlu0 %v208_v48  ;;  %203 = vadd.xlane.f32.xlu1 %v202_v50  ;;  %vm136_vm9 = vcmp.gt.f32.partialorder %v568_v25, 0.51082563  ;;  %v574_v32 = vadd.f32 %v107_v27, %v79_v22  ;;  %v116_v37 = vsel %vm115_vm8, %v113_v31, %v110_v14 }
  0x52   :  { %vm135_vm7 = vcmp.gt.f32.partialorder %v565_v13, 0.51082563  ;;  %v140_v28 = vsel %vm136_vm9, %v568_v25, 0.0  ;;  %v295_v36 = vsel %vm136_vm9, 1.0, %v445_v34  ;;  %v120_v39 = vadd.f32 %v116_v37, %v80_v9 }
  0x53   :  { %v139_v30 = vsel %vm135_vm7, %v565_v13, 0.0  ;;  %v294_v35 = vsel %vm135_vm7, 1.0, %v445_v34  ;;  %vm137_vm10 = vcmp.gt.f32.partialorder %v574_v32, 0.51082563  ;;  %v298_v8 = vpack.c.bf16 %v568_v25, %v565_v13 }
  0x54   :  { %v143_v33 = vadd.f32 %v140_v28, %v139_v30  ;;  %v163_v38 = vadd.f32 %v295_v36, %v294_v35  ;;  %v141_v40 = vsel %vm137_vm10, %v574_v32, 0.0  ;;  %v296_v41 = vsel %vm137_vm10, 1.0, %v445_v34 }
  0x55   :  { %200 = vadd.xlane.f32.xlu0 %v199_v51  ;;  %vm138_vm11 = vcmp.gt.f32.partialorder %v120_v39, 0.51082563  ;;  %v299_v24 = vpack.c.bf16 %v120_v39, %v574_v32  ;;  %133 = vst [vmem:[#allocation7] sm:$0xff] %v298_v8 }
  0x56   :  { %v144_v42 = vadd.f32 %v143_v33, %v141_v40  ;;  %v164_v43 = vadd.f32 %v296_v41, %v163_v38  ;;  %v142_v29 = vsel %vm138_vm11, %v120_v39, 0.0  ;;  %v297_v44 = vsel %vm138_vm11, 1.0, %v445_v34 }
  0x57   :  { %134 = vst [vmem:[#allocation7 + $0x8] sm:$0xff] %v299_v24 }
  0x58   :  { %v145_v45 = vadd.f32 %v144_v42, %v142_v29  ;;  %v165_v46 = vadd.f32 %v297_v44, %v164_v43 }
  0x5a   :  { %146 = vadd.xlane.f32.xlu0 %v145_v45  ;;  %166 = vadd.xlane.f32.xlu1 %v165_v46 }
  0xba   :  { %v213_v47 = vpop.xlane.xlu1 %212 }
  0xbe   :  { %v216_v50 = vpop.xlane.xlu1 %215 }
  0xda   :  { %v207_v48 = vpop.xlane.xlu0 %206 }
  0xdb   :  { %v221_v49 = vadd.f32 %v213_v47, %v207_v48 }
  0xdd   :  { %v223_v51 = vadd.f32 1.0, %v221_v49 }
  0xde   :  { %v210_v52 = vpop.xlane.xlu0 %209  ;;  %v204_v57 = vpop.xlane.xlu1 %203 }
  0xdf   :  { %339 = vrcp.f32 %v223_v51  ;;  %v222_v53 = vadd.f32 %v216_v50, %v210_v52  ;;  %v218_v59 = vmul.f32 2.0, %v204_v57 }
  0xe1   :  { %v224_v54 = vadd.f32 1.0, %v222_v53  ;;  %v220_v62 = vadd.f32 1.0, %v218_v59 }
  0xe2   :  { %v201_v55 = vpop.xlane.xlu0 %200 }
  0xe3   :  { %341 = vrcp.f32 %v224_v54  ;;  %v217_v56 = vmul.f32 2.0, %v201_v55 }
  0xe5   :  { %v219_v58 = vadd.f32 1.0, %v217_v56 }
  0xe7   :  { %v147_v3 = vpop.xlane.xlu0 %146  ;;  %v167_v2 = vpop.xlane.xlu1 %166 }
  0xe8   :  { %v148_v4 = vrot.slane %v147_v3, 4  ;;  %v168_v11 = vrot.slane %v167_v2, 4 }
  0xe9   :  { %v340_v60 = vpop.eup %339 }
  0xea   :  { %v226_v61 = vmul.f32 %v340_v60, %v219_v58  ;;  %v149_v12 = vadd.f32 %v148_v4, %v147_v3  ;;  %v169_v15 = vadd.f32 %v168_v11, %v167_v2 }
  0xec   :  { %v229_v0 = vsub.f32 1.0, %v226_v61  ;;  %v150_v16 = vrot.slane %v149_v12, 2  ;;  %v170_v17 = vrot.slane %v169_v15, 2 }
  0xed   :  { %v342_v63 = vpop.eup %341 }
  0xee   :  { %v228_v5 = vmul.f32 %v342_v63, %v220_v62  ;;  %v232_v7 = vsel %vm231_vm12, %v229_v0, 0.0  ;;  %v171_v18 = vadd.f32 %v170_v17, %v169_v15  ;;  %v151_v19 = vadd.f32 %v150_v16, %v149_v12 }
  0xf0   :  { %v230_v6 = vsub.f32 1.0, %v228_v5  ;;  %v152_v20 = vrot.slane %v151_v19, 1  ;;  %v172_v21 = vrot.slane %v171_v18, 1 }
  0xf2   :  { %v233_v10 = vsel %vm231_vm12, %v230_v6, 0.0  ;;  %v153_v22 = vadd.f32 %v152_v20, %v151_v19  ;;  %v173_v23 = vadd.f32 %v172_v21, %v171_v18 }
  0xf3   :  { %v234_v1 = vadd.f32 %v233_v10, %v232_v7 }
  0xf4   :  { %300 = vpush %v153_v22 }
  0xf5   :  { %235 = vadd.xlane.f32.xlu0 %v234_v1  ;;  %302 = vpush %v173_v23 }
  0xf6   :  { %398 = shalt.err (!%p395_p6)
}
  0xf7   :  { %s399_s16 = scalar_lea.hbm %s611_s2, 256 }
  0xf8   :  { %p400_p7 = scmp.ne.s32.totalorder %s611_s2, %s399_s16  ;;  %p403_p8 = scmp.lt.u32.totalorder %s399_s16, %s611_s2 }
  0xfa   :  { %p405_p9 = pnand %p403_p8, %p400_p7 }
  0xfc   :  { %408 = shalt.err (!%p405_p9)
}
  0xfd   :  { %271 = dma.vmem_to_hbm [thread:$0]  %s266_s12, 256, %s611_s2, [#allocation4], %s443_s0, %s443_s0, %s444_s9   ;;  %v244_v31 = vlaneseq }
  0xfe   :  { %s447_s26 = smov [#allocation8]  }
  0xff   :  { %v247_v32 = vand.u32 127, %v244_v31  ;;  %v245_v28 = vshrl.u32 %v244_v31, 7  ;;  %s278_s2 = sshll.u32 %s447_s26, 4  ;;  %s279_s2 = int_to_ptr.vmem [resolvable:$true] %s278_s2 }
 0x100   :  { %s409_s27 = scalar_lea.vmem %s279_s2, 128  ;;  %p414_p11 = scmp.lt.s32.totalorder %s279_s2, %s279_s2 }
 0x101   :  { %vm250_vm13 = vcmp.eq.s32.totalorder %v247_v32, 2  ;;  %vm249_vm14 = vcmp.eq.s32.totalorder %v247_v32, 1  ;;  %vm248_vm15 = vcmp.eq.s32.totalorder %v247_v32, 0  ;;  %vm257_vm0 = vcmp.eq.s32.totalorder %v245_v28, 0  ;;  %p410_p10 = scmp.ne.s32.totalorder %s279_s2, %s409_s27  ;;  %p415_p12 = scmp.lt.s32.totalorder %s409_s27, %s409_s27 }
 0x103   :  { %p416_p13 = por %p415_p12, %p414_p11 }
 0x105   :  { %p417_p0 = pnand %p416_p13, %p410_p10 }
 0x125   :  { %s301_s23 = spop %300 }
 0x126   :  { %s303_s24 = spop %302  ;;  %v255_v36 = vstv %s301_s23 }
 0x127   :  { %v253_v34 = vstv %s303_s24 }
 0x182   :  { %v236_v13 = vpop.xlane.xlu0 %235 }
 0x183   :  { %v237_v25 = vrot.slane %v236_v13, 4 }
 0x185   :  { %v238_v9 = vadd.f32 %v237_v25, %v236_v13 }
 0x187   :  { %v239_v14 = vrot.slane %v238_v9, 2 }
 0x189   :  { %v240_v26 = vadd.f32 %v239_v14, %v238_v9 }
 0x18b   :  { %v241_v27 = vrot.slane %v240_v26, 1 }
 0x18d   :  { %v242_v30 = vadd.f32 %v241_v27, %v240_v26 }
 0x18f   :  { %304 = vpush %v242_v30 }
 0x1c0   :  { %s305_s25 = spop %304 }
 0x1c1   :  { %v251_v33 = vstv %s305_s25 }
 0x1c2   :  { %v252_v35 = vsel %vm250_vm13, %v251_v33, 0.0 }
 0x1c3   :  { %v254_v37 = vsel %vm249_vm14, %v253_v34, %v252_v35 }
 0x1c4   :  { %v256_v38 = vsel %vm248_vm15, %v255_v36, %v254_v37 }
 0x1c5   :  { %v258_v39 = vsel %vm257_vm0, %v256_v38, 0.0 }
 0x1c6   :  { %259 = vst [vmem:[#allocation8] sm:$0xff] %v258_v39 }
 0x1c7   :  { %420 = shalt.err (!%p417_p0)
}
 0x1c8   :  { %s421_s30 = scalar_lea.hbm %s612_s3, 128 }
 0x1c9   :  { %p422_p1 = scmp.ne.s32.totalorder %s612_s3, %s421_s30  ;;  %p425_p2 = scmp.lt.u32.totalorder %s421_s30, %s612_s3 }
 0x1cb   :  { %p427_p3 = pnand %p425_p2, %p422_p1 }
 0x1cd   :  { %430 = shalt.err (!%p427_p3)
}
 0x1ce   :  { %281 = dma.vmem_to_hbm [thread:$0]  %s279_s2, 128, %s612_s3, [#allocation9]  }
 0x1cf   :  { %435 = dma.done.wait [#allocation4], 256  }
 0x1d0   :  { %436 = vsyncadd [#allocation4], 4294967040 }
 0x1d1   :  { %437 = dma.done.wait [#allocation9], 128  }
 0x1d2   :  { %438 = vsyncadd [#allocation9], 4294967168 }
 0x1d3   :  { %288 = vsyncpa [#allocation3], 1 }
 0x1d4   :  { %289 = vsyncpa [#allocation6], 1 }
 0x1d5   :  { %290 = vsyncpa [#allocation4], 1 }
 0x1d6   :  { %291 = vsyncpa [#allocation9], 1 }

</bundles_post_ra>
